<compile_context>
chip_gen: v7x
topology: tpu7x:2x2x1
jax: 0.10.0
libtpu: 0.0.40
codegen_flags: <defaults>
</compile_context>

<pallas_src>
import jax
import jax.numpy as jnp
from jax.experimental import pallas as pl
from jax.experimental.pallas import tpu as pltpu

N_PAD = 128                           # lane-dense width for the second matmul's MXU tile
VMEM_TARGET_BYTES = 32 * 1024 * 1024  # safe scoped-VMEM target on v5e / v6e / v7x


def _round_up(x, m):
    return ((x + m - 1) // m) * m


def classifier_kernel(x_ref, w1_ref, b1_ref, w2_ref, b2_ref, o_ref):
    # x_ref : (TM, hidden_dim)       f32  (cast to bf16 here; cast hides under the DMA)
    # w1_ref: (hidden_dim, mlp_pad)  bf16    b1_ref: (1, mlp_pad)  f32
    # w2_ref: (mlp_pad, N_PAD)       bf16    b2_ref: (1, out_dim)  f32
    # o_ref : (TM, out_dim)          f32  (narrow, masked vst -- tiny cost, 64x less HBM)
    out_dim = o_ref.shape[-1]

    x = x_ref[...].astype(jnp.bfloat16)

    # Hidden layer: bf16 MXU matmul, f32 accumulation; bias + ReLU in f32 (v5e has no bf16 VPU).
    h = jnp.dot(x, w1_ref[...], preferred_element_type=jnp.float32) + b1_ref[...]
    h = jnp.maximum(h, 0.0)

    # Output layer: full 128-lane MXU tile, then slice to the real out_dim (lane-0 slice, free).
    y = jnp.dot(h.astype(jnp.bfloat16), w2_ref[...], preferred_element_type=jnp.float32)
    y = y[:, :out_dim] + b2_ref[...]

    # Sigmoid via tanh: a single EUP transcendental per element (vs exp + reciprocal), exact.
    o_ref[...] = (0.5 + 0.5 * jnp.tanh(0.5 * y)).astype(o_ref.dtype)


def _pick_tm(M, hidden_dim, mlp_pad, out_dim):
    """Largest row tile that fits the VMEM budget, with >= 2 grid steps when M allows."""
    def need(tm):
        x_tiles = 2 * tm * hidden_dim * 4               # double-buffered f32 input tile
        o_tiles = 2 * tm * out_dim * 4                  # double-buffered f32 output tile
        weights = 2 * (hidden_dim * mlp_pad * 2         # w1 bf16 (conservative: 2 buffers)
                       + mlp_pad * 4                    # b1 f32
                       + mlp_pad * N_PAD * 2            # w2 bf16 (padded)
                       + out_dim * 4)                   # b2 f32
        live = tm * mlp_pad * 6 + tm * N_PAD * 4        # h (f32 + bf16 copy) and y (f32)
        return x_tiles + o_tiles + weights + live

    tm = 1024  # v6e-measured sweet spot for mem-bound row streaming; shrunk below if needed
    while tm > 8 and need(tm) > (3 * VMEM_TARGET_BYTES) // 4:
        tm //= 2
    # NOTE: if the resident weights alone exceed the budget (very large hidden/mlp widths),
    # a K/N-split grid axis would be required; not needed at classifier-sized feature dims.

    # Don't tile past the actual row count.
    tm = min(tm, max(8, _round_up(M, 8)))
    # v7x: keep at least 2 grid steps so both TensorCores get work under "parallel".
    if M > 8 and pl.cdiv(M, tm) < 2:
        tm = max(8, _round_up(pl.cdiv(M, 2), 8))
    return tm


@jax.jit
def classifier_forward(input_data, w1, b1, w2, b2):
    """input_data: (num_layers, batch, hidden_dim) -> scores: (num_layers, batch, out_dim)"""
    num_layers, batch, hidden_dim = input_data.shape
    mlp_dim = w1.shape[1]
    out_dim = w2.shape[1]
    mlp_pad = _round_up(mlp_dim, 128)

    M = num_layers * batch
    TM = _pick_tm(M, hidden_dim, mlp_pad, out_dim)
    grid = (pl.cdiv(M, TM),)   # non-divisible rows handled by Pallas boundary masking

    # x stays f32: reshape is metadata under jit; the bf16 cast happens inside the kernel.
    x2d = input_data.reshape(M, hidden_dim)

    # Weight prep (tiny, fused under jit): bf16 matmul operands, mlp axis zero-padded to 128,
    # second-layer weight padded to a full 128-lane MXU tile. Padded columns have zero bias
    # and zero w2 rows, so the result is exact.
    w1_p = jnp.zeros((hidden_dim, mlp_pad), jnp.bfloat16).at[:, :mlp_dim].set(
        w1.astype(jnp.bfloat16))
    b1_p = jnp.zeros((1, mlp_pad), jnp.float32).at[0, :mlp_dim].set(b1.astype(jnp.float32))
    w2_p = jnp.zeros((mlp_pad, N_PAD), jnp.bfloat16).at[:mlp_dim, :out_dim].set(
        w2.astype(jnp.bfloat16))
    b2_2d = b2.reshape(1, out_dim).astype(jnp.float32)

    cost = pl.CostEstimate(
        flops=2 * M * (hidden_dim * mlp_dim + mlp_dim * out_dim),
        transcendentals=M * out_dim,  # one tanh per output element
        bytes_accessed=(M * hidden_dim * 4 + M * out_dim * 4
                        + hidden_dim * mlp_dim * 2 + mlp_dim * 4
                        + mlp_dim * out_dim * 2 + out_dim * 4),
    )

    out2d = pl.pallas_call(
        classifier_kernel,
        out_shape=jax.ShapeDtypeStruct((M, out_dim), jnp.float32),
        grid=grid,
        in_specs=[
            pl.BlockSpec((TM, hidden_dim), lambda i: (i, 0)),      # x: row-tiled f32 stream
            pl.BlockSpec((hidden_dim, mlp_pad), lambda i: (0, 0)),  # w1: resident
            pl.BlockSpec((1, mlp_pad), lambda i: (0, 0)),           # b1: resident
            pl.BlockSpec((mlp_pad, N_PAD), lambda i: (0, 0)),       # w2: resident
            pl.BlockSpec((1, out_dim), lambda i: (0, 0)),           # b2: resident
        ],
        out_specs=pl.BlockSpec((TM, out_dim), lambda i: (i, 0)),    # narrow f32 writeback
        compiler_params=pltpu.CompilerParams(
            dimension_semantics=("parallel",),
            vmem_limit_bytes=VMEM_TARGET_BYTES,
        ),
        cost_estimate=cost,
    )(x2d, w1_p, b1_p, w2_p, b2_2d)

    return out2d.reshape(num_layers, batch, out_dim)


def _reference(input_data, w1, b1, w2, b2):
    h = jnp.maximum(input_data @ w1 + b1, 0.0)
    y = h @ w2 + b2
    return jax.nn.sigmoid(y)


if __name__ == "__main__":
    # Small shapes implied by the forward: (num_layers, batch, hidden_dim)
    num_layers, batch, hidden_dim = 1, 2, 32
    mlp_dim, out_dim = 64, 2  # MLP: hidden_dim -> mlp_dim -> out_dim (binary scores)

    key = jax.random.PRNGKey(0)
    k_x, k_w1, k_b1, k_w2, k_b2 = jax.random.split(key, 5)

    input_data = jax.random.normal(k_x, (num_layers, batch, hidden_dim), dtype=jnp.float32)

    # Deterministic parameter init (PyTorch-Linear-like uniform scaling)
    bound1 = 1.0 / jnp.sqrt(hidden_dim)
    w1 = jax.random.uniform(k_w1, (hidden_dim, mlp_dim), jnp.float32, -bound1, bound1)
    b1 = jax.random.uniform(k_b1, (mlp_dim,), jnp.float32, -bound1, bound1)
    bound2 = 1.0 / jnp.sqrt(mlp_dim)
    w2 = jax.random.uniform(k_w2, (mlp_dim, out_dim), jnp.float32, -bound2, bound2)
    b2 = jax.random.uniform(k_b2, (out_dim,), jnp.float32, -bound2, bound2)

    scores = classifier_forward(input_data, w1, b1, w2, b2)
    jax.block_until_ready(scores)

    ref_f32 = _reference(input_data, w1, b1, w2, b2)
    assert scores.shape == (num_layers, batch, out_dim)
    # bf16 matmul operands => slightly looser tolerance vs the f32 reference
    assert jnp.allclose(scores, ref_f32, atol=1e-2, rtol=1e-2)

    print("KERNEL_OK")
</pallas_src>

<mosaic_0001>
module attributes {stable_mosaic.version = 11 : i64} {
  func.func @classifier_kernel(%arg0: i32, %arg1: memref<8x32xf32, #tpu.memory_space<vmem>>, %arg2: memref<32x128xbf16, #tpu.memory_space<vmem>>, %arg3: memref<1x128xf32, #tpu.memory_space<vmem>>, %arg4: memref<128x128xbf16, #tpu.memory_space<vmem>>, %arg5: memref<1x2xf32, #tpu.memory_space<vmem>>, %arg6: memref<8x2xf32, #tpu.memory_space<vmem>>) attributes {dimension_semantics = [#tpu.dimension_semantics<parallel>], iteration_bounds = array<i64: 1>, scalar_prefetch = 0 : i64, scratch_operands = 0 : i64, tpu.core_type = #tpu.core_type<tc>, window_params = [{transform_indices = @transform_0, window_bounds = array<i64: 8, 32>}, {pipeline_mode = #tpu.pipeline_mode<synchronous>, transform_indices = @transform_1, window_bounds = array<i64: 32, 128>}, {pipeline_mode = #tpu.pipeline_mode<synchronous>, transform_indices = @transform_2, window_bounds = array<i64: 1, 128>}, {pipeline_mode = #tpu.pipeline_mode<synchronous>, transform_indices = @transform_3, window_bounds = array<i64: 128, 128>}, {pipeline_mode = #tpu.pipeline_mode<synchronous>, transform_indices = @transform_4, window_bounds = array<i64: 1, 2>}, {transform_indices = @transform_5, window_bounds = array<i64: 8, 2>}]} {
    %c0 = arith.constant 0 : index
    %c0_0 = arith.constant 0 : index
    %0 = vector.load %arg1[%c0, %c0_0] : memref<8x32xf32, #tpu.memory_space<vmem>>, vector<8x32xf32>
    %1 = arith.truncf %0 : vector<8x32xf32> to vector<8x32xbf16>
    %c0_1 = arith.constant 0 : index
    %c0_2 = arith.constant 0 : index
    %2 = vector.load %arg2[%c0_1, %c0_2] : memref<32x128xbf16, #tpu.memory_space<vmem>>, vector<32x128xbf16>
    %cst = arith.constant dense<0.000000e+00> : vector<8x128xf32>
    %3 = tpu.matmul %1, %2, %cst {dimension_numbers = #tpu.dot_dimension_numbers<[1], [0], [0], [1], [0, 0, 1, 1], [], []>} : vector<8x32xbf16>, vector<32x128xbf16>, vector<8x128xf32> -> vector<8x128xf32>
    %c0_3 = arith.constant 0 : index
    %c0_4 = arith.constant 0 : index
    %4 = vector.load %arg3[%c0_3, %c0_4] : memref<1x128xf32, #tpu.memory_space<vmem>>, vector<1x128xf32>
    %5 = vector.broadcast %4 : vector<1x128xf32> to vector<8x128xf32>
    %6 = arith.addf %3, %5 : vector<8x128xf32>
    %cst_5 = arith.constant 0.000000e+00 : f32
    %7 = vector.broadcast %cst_5 : f32 to vector<8x128xf32>
    %8 = arith.maximumf %6, %7 : vector<8x128xf32>
    %9 = arith.truncf %8 : vector<8x128xf32> to vector<8x128xbf16>
    %c0_6 = arith.constant 0 : index
    %c0_7 = arith.constant 0 : index
    %10 = vector.load %arg4[%c0_6, %c0_7] : memref<128x128xbf16, #tpu.memory_space<vmem>>, vector<128x128xbf16>
    %cst_8 = arith.constant dense<0.000000e+00> : vector<8x128xf32>
    %11 = tpu.matmul %9, %10, %cst_8 {dimension_numbers = #tpu.dot_dimension_numbers<[1], [0], [0], [1], [0, 0, 1, 1], [], []>} : vector<8x128xbf16>, vector<128x128xbf16>, vector<8x128xf32> -> vector<8x128xf32>
    %12 = vector.extract_strided_slice %11 {offsets = [0, 0], sizes = [8, 2], strides = [1, 1]} : vector<8x128xf32> to vector<8x2xf32>
    %c0_9 = arith.constant 0 : index
    %c0_10 = arith.constant 0 : index
    %13 = vector.load %arg5[%c0_9, %c0_10] : memref<1x2xf32, #tpu.memory_space<vmem>>, vector<1x2xf32>
    %14 = vector.broadcast %13 : vector<1x2xf32> to vector<8x2xf32>
    %15 = arith.addf %12, %14 : vector<8x2xf32>
    %cst_11 = arith.constant 5.000000e-01 : f32
    %16 = vector.broadcast %cst_11 : f32 to vector<8x2xf32>
    %17 = arith.mulf %16, %15 : vector<8x2xf32>
    %18 = math.tanh %17 : vector<8x2xf32>
    %cst_12 = arith.constant 5.000000e-01 : f32
    %19 = vector.broadcast %cst_12 : f32 to vector<8x2xf32>
    %20 = arith.mulf %19, %18 : vector<8x2xf32>
    %cst_13 = arith.constant 5.000000e-01 : f32
    %21 = vector.broadcast %cst_13 : f32 to vector<8x2xf32>
    %22 = arith.addf %21, %20 : vector<8x2xf32>
    %c0_14 = arith.constant 0 : index
    %c0_15 = arith.constant 0 : index
    %23 = vector.load %arg6[%c0_14, %c0_15] : memref<8x2xf32, #tpu.memory_space<vmem>>, vector<8x2xf32>
    tpu.vector_store %arg6[%c0_14, %c0_15], %22 {strides = array<i32>} : memref<8x2xf32, #tpu.memory_space<vmem>>, vector<8x2xf32>,
    return
  }
  func.func @transform_0(%arg0: i32) -> (i32, i32) {
    %c0_i32 = arith.constant 0 : i32
    %c0_i32_0 = arith.constant 0 : i32
    return %arg0, %c0_i32 : i32, i32
  }
  func.func @transform_1(%arg0: i32) -> (i32, i32) {
    %c0_i32 = arith.constant 0 : i32
    %c0_i32_0 = arith.constant 0 : i32
    %c0_i32_1 = arith.constant 0 : i32
    return %c0_i32, %c0_i32_0 : i32, i32
  }
  func.func @transform_2(%arg0: i32) -> (i32, i32) {
    %c0_i32 = arith.constant 0 : i32
    %c0_i32_0 = arith.constant 0 : i32
    %c0_i32_1 = arith.constant 0 : i32
    return %c0_i32, %c0_i32_0 : i32, i32
  }
  func.func @transform_3(%arg0: i32) -> (i32, i32) {
    %c0_i32 = arith.constant 0 : i32
    %c0_i32_0 = arith.constant 0 : i32
    %c0_i32_1 = arith.constant 0 : i32
    return %c0_i32, %c0_i32_0 : i32, i32
  }
  func.func @transform_4(%arg0: i32) -> (i32, i32) {
    %c0_i32 = arith.constant 0 : i32
    %c0_i32_0 = arith.constant 0 : i32
    %c0_i32_1 = arith.constant 0 : i32
    return %c0_i32, %c0_i32_0 : i32, i32
  }
  func.func @transform_5(%arg0: i32) -> (i32, i32) {
    %c0_i32 = arith.constant 0 : i32
    %c0_i32_0 = arith.constant 0 : i32
    return %arg0, %c0_i32 : i32, i32
  }
}

</mosaic_0001>

<bundles_post_ra>
// kernel: classifier_forward.1
= control target key start
LH: loop header
LB: loop body
LE: loop exit
PB: predicated region body
PF: predicated region fallthrough
CT: control target
= control target key end

     0   :  { %10 = vsyncpa [#allocation3], 0  ;;  %v321_v1 = vmov 0.0   ;;  %vm322_vm0 = vmmov 0   ;;  %vm47_vm1 = vcmask 261120   ;;  %vm209_vm2 = vcmask 15360   ;;  %s407_s0 = inlined_call_operand.vmem [shape: f32[2,32], index: 0, kind: input, shape index: {}]   ;;  %s408_s1 = inlined_call_operand.vmem [shape: bf16[32,128], index: 1, kind: input, shape index: {}]   ;;  %s409_s2 = inlined_call_operand.vmem [shape: f32[1,128], index: 2, kind: input, shape index: {}]   ;;  %s410_s3 = inlined_call_operand.vmem [shape: bf16[128,128], index: 3, kind: input, shape index: {}]   ;;  %s411_s4 = inlined_call_operand.vmem [shape: f32[1,2], index: 4, kind: input, shape index: {}]   ;;  %s412_s5 = inlined_call_operand.hbm [shape: f32[2,2], index: 5, kind: output, shape index: {}]  }
   0x1   :  { %v285_v0 = vld [vmem:[%s408_s1] sm:$0xff]   ;;  %252 = vmatprep.subr.bf16.mxu0 %v321_v1  ;;  %260 = vmatprep.subr.bf16.mxu1 %v321_v1  ;;  %v286_v2 = vld [vmem:[%s408_s1 + $0x8] sm:$0xff]   ;;  %v289_v7 = vld [vmem:[%s410_s3 + $0x10] sm:$0xff]  }
   0x2   :  { %253 = vmatpush3.bf16.msra.mxu0 %v285_v0  ;;  %v22_v3 = vld [vmem:[%s407_s0] sm:$0xff]  ;;  %256 = vmatprep.mubr.msk.bf16.mxu0 %vm322_vm0, %v321_v1  ;;  %v288_v6 = vld [vmem:[%s410_s3 + $0x8] sm:$0xff]   ;;  %v290_v8 = vld [vmem:[%s410_s3 + $0x18] sm:$0xff]  }
   0x3   :  { %254 = vmatprep.subr.bf16.mxu0 %v321_v1  ;;  %v287_v4 = vld [vmem:[%s410_s3] sm:$0xff]   ;;  %276 = vmatprep.mubr.msk.bf16.mxu1 %vm322_vm0, %v321_v1  ;;  %v23_v5 = vpack.c.bf16 %v22_v3, %v22_v3  ;;  %v292_v10 = vld [vmem:[%s410_s3 + $0x28] sm:$0xff]   ;;  %v293_v11 = vld [vmem:[%s410_s3 + $0x30] sm:$0xff]  }
   0x4   :  { %261 = vmatpush3.bf16.msra.mxu1 %v287_v4  ;;  %v291_v9 = vld [vmem:[%s410_s3 + $0x20] sm:$0xff]   ;;  %v294_v12 = vld [vmem:[%s410_s3 + $0x38] sm:$0xff]  }
   0x5   :  { %262 = vmatprep.subr.bf16.mxu1 %v321_v1  ;;  %v227_v13 = vld [vmem:[%s409_s2] ss:$0 sm:$0xff] }
   0x6   :  { %255 = vmatpush3.bf16.msra.mxu0 %v286_v2  ;;  %v239_v21 = vld [vmem:[%s411_s4] ss:$0 sm:$0xff] }
   0x8   :  { %263 = vmatpush3.bf16.msra.mxu1 %v288_v6 }
   0x9   :  { %257 = vmatmul.mubr.msk.bf16.vlgmr.msra.gmra.mrb[0].mxu0 %vm47_vm1, %v23_v5  ;;  %264 = vmatprep.subr.bf16.mxu1 %v321_v1 }
   0xc   :  { %265 = vmatpush3.bf16.msra.mxu1 %v289_v7 }
   0xd   :  { %266 = vmatprep.subr.bf16.mxu1 %v321_v1 }
  0x10   :  { %267 = vmatpush3.bf16.msra.mxu1 %v290_v8 }
  0x11   :  { %268 = vmatprep.subr.bf16.mxu1 %v321_v1 }
  0x14   :  { %269 = vmatpush3.bf16.msra.mxu1 %v291_v9 }
  0x15   :  { %270 = vmatprep.subr.bf16.mxu1 %v321_v1 }
  0x18   :  { %271 = vmatpush3.bf16.msra.mxu1 %v292_v10 }
  0x19   :  { %272 = vmatprep.subr.bf16.mxu1 %v321_v1 }
  0x1c   :  { %273 = vmatpush3.bf16.msra.mxu1 %v293_v11 }
  0x1d   :  { %274 = vmatprep.subr.bf16.mxu1 %v321_v1 }
  0x20   :  { %275 = vmatpush3.bf16.msra.mxu1 %v294_v12 }
  0xdc   :  { %v85_v14 = vpop.f32.mrb[0].mxu0 }
  0xdd   :  { %v86_v15 = vadd.f32 %v227_v13, %v85_v14  ;;  %v258_v16 = vpop.f32.mrb[1].mxu0 }
  0xde   :  { %v88_v17 = vpop.f32.mrb[2].mxu0 }
  0xdf   :  { %v91_v18 = vmax.f32 %v86_v15, 0.0  ;;  %v259_v19 = vpop.f32.mrb[3].mxu0 }
  0xe1   :  { %v92_v20 = vpack.c.bf16 %v91_v18, %v91_v18 }
  0xe3   :  { %277 = vmatmul.mubr.bf16.vlgmr.msra.gmra.mrb[0].mxu1 %v92_v20 }
 0x1b6   :  { %v191_v22 = vpop.f32.mrb[0].mxu1 }
 0x1b7   :  { %v204_v23 = vadd.f32 %v239_v21, %v191_v22  ;;  %v278_v24 = vpop.f32.mrb[1].mxu1 }
 0x1b8   :  { %v194_v25 = vpop.f32.mrb[2].mxu1 }
 0x1b9   :  { %v205_v26 = vmul.f32 0.5, %v204_v23  ;;  %v279_v27 = vpop.f32.mrb[3].mxu1 }
 0x1bb   :  { %295 = vtanh.f32 %v205_v26 }
 0x1c5   :  { %v296_v28 = vpop.eup %295 }
 0x1c6   :  { %v207_v29 = vmul.f32 0.5, %v296_v28 }
 0x1c8   :  { %v208_v30 = vadd.f32 0.5, %v207_v29 }
 0x1ca   :  { %210 = vst.msk [vmem:[#allocation2] sm:$0xff] %vm209_vm2, %v208_v30 }
 0x1cb   :  { %215 = vsyncadd [#allocation3], 96  ;;  %s323_s2 = smov [#allocation2]  }
 0x1cc   :  { %s216_s3 = sshll.u32 %s323_s2, 4  ;;  %s217_s3 = int_to_ptr.vmem [resolvable:$true] %s216_s3 }
 0x1cd   :  { %s297_s17 = scalar_lea.vmem %s217_s3, 32  ;;  %s301_s18 = scalar_lea.vmem %s217_s3, 128 }
 0x1ce   :  { %p298_p0 = scmp.ne.s32.totalorder %s217_s3, %s297_s17  ;;  %p302_p1 = scmp.lt.s32.totalorder %s217_s3, %s217_s3 }
 0x1cf   :  { %p303_p2 = scmp.lt.s32.totalorder %s301_s18, %s297_s17 }
 0x1d1   :  { %p304_p3 = por %p303_p2, %p302_p1 }
 0x1d3   :  { %p305_p4 = pnand %p304_p3, %p298_p0 }
 0x1d5   :  { %308 = shalt.err (!%p305_p4)
}
 0x1d6   :  { %s309_s20 = scalar_lea.hbm %s412_s5, 32 }
 0x1d7   :  { %p310_p5 = scmp.ne.s32.totalorder %s412_s5, %s309_s20  ;;  %p313_p6 = scmp.lt.u32.totalorder %s309_s20, %s412_s5 }
 0x1d9   :  { %p315_p7 = pnand %p313_p6, %p310_p5 }
 0x1db   :  { %318 = shalt.err (!%p315_p7)
}
 0x1dc   :  { %s324_s25 = smov 32   ;;  %s325_s26 = smov 2  }
 0x1dd   :  { %222 = dma.vmem_to_hbm [thread:$0]  %s217_s3, 32, %s412_s5, [#allocation3], %s324_s25, %s324_s25, %s325_s26  }
 0x1de   :  { %319 = dma.done.wait [#allocation3], 128  }
 0x1df   :  { %320 = vsyncadd [#allocation3], 4294967168 }
 0x1e0   :  { %226 = vsyncpa [#allocation3], 1 }

</bundles_post_ra>
